<compile_context>
chip_gen: v5e
topology: v5e:2x2
jax: 0.10.0
libtpu: 0.0.40
codegen_flags: <defaults>
</compile_context>

<pallas_src>
import jax
import jax.numpy as jnp
from jax.experimental import pallas as pl
from jax.experimental.pallas import tpu as pltpu


def _bi_interaction_kernel(t_ref, h_ref, o_ref):
    # t_ref: (TB, H) f32   h_ref: (TB, L, H) input dtype   o_ref: (TB, L)
    t = t_ref[...]                                    # (TB, H), already f32
    h = h_ref[...].astype(jnp.float32)                # upcast in-vreg only
    # VPU broadcast-multiply + lane reduce over H; accumulate in f32.
    logits = jnp.sum(h * t[:, None, :], axis=-1)      # (TB, L)
    o_ref[...] = logits.astype(o_ref.dtype)


def _round_up(x, m):
    return ((x + m - 1) // m) * m


def _choose_batch_tile(B, L, H, itemsize, target_bytes=4 * 1024 * 1024):
    """Batch tile: multiple of 8, hist tile ~target_bytes (double-buffered by
    the pipeline, so this stays well under the scoped-VMEM limit on v5e/v6e/v7x)."""
    per_row = max(1, L * H * itemsize)
    tb = max(1, target_bytes // per_row)
    tb = max(8, (tb // 8) * 8)                 # sublane-aligned 2-D blocks
    tb = min(tb, _round_up(B, 8))              # never bigger than padded batch
    # Prefer >= 2 grid steps when the batch allows it (lets v7x shard the
    # "parallel" axis across its 2 TensorCores).
    if _round_up(B, tb) // tb < 2 and B > 8:
        tb = max(8, _round_up(pl.cdiv(B, 2), 8))
    return tb


def bi_interaction_activation_unit(query, weight, hist_behavior):
    """attention_logits = einsum('bq,qh,blh->bl', query, W, hist)[..., None]"""
    B, Q = query.shape
    Bh, L, H = hist_behavior.shape
    assert B == Bh and weight.shape == (Q, H)
    out_dtype = query.dtype

    # 1) Hoist the tiny projection: one batched [B, H] matmul outside the kernel.
    t = jnp.dot(query, weight, preferred_element_type=jnp.float32)  # (B, H) f32

    # 2) Tile batch; pad B up to a multiple of TB (zero rows -> zero logits,
    #    sliced off afterwards).
    itemsize = jnp.dtype(hist_behavior.dtype).itemsize
    tb = _choose_batch_tile(B, L, H, itemsize)
    b_pad = _round_up(B, tb)
    if b_pad != B:
        t = jnp.pad(t, ((0, b_pad - B), (0, 0)))
        hist_behavior = jnp.pad(hist_behavior, ((0, b_pad - B), (0, 0), (0, 0)))

    cost = pl.CostEstimate(
        flops=2 * b_pad * L * H,
        transcendentals=0,
        bytes_accessed=(b_pad * L * H * itemsize            # hist stream
                        + b_pad * H * 4                      # T (f32)
                        + b_pad * L * jnp.dtype(out_dtype).itemsize),
    )

    # 3) Lane-dense (TB, L) output blocks; unsqueeze done in the wrapper.
    logits = pl.pallas_call(
        _bi_interaction_kernel,
        out_shape=jax.ShapeDtypeStruct((b_pad, L), out_dtype),
        grid_spec=pltpu.PrefetchScalarGridSpec(
            num_scalar_prefetch=0,
            grid=(b_pad // tb,),
            in_specs=[
                pl.BlockSpec((tb, H), lambda i: (i, 0)),
                pl.BlockSpec((tb, L, H), lambda i: (i, 0, 0)),
            ],
            out_specs=pl.BlockSpec((tb, L), lambda i: (i, 0)),
        ),
        compiler_params=pltpu.CompilerParams(
            dimension_semantics=("parallel",),
            vmem_limit_bytes=32 * 1024 * 1024,
        ),
        cost_estimate=cost,
    )(t, hist_behavior)

    return logits[:B, :, None]


if __name__ == "__main__":
    # Small, deterministic shapes consistent with the module's forward.
    B, Q, H, L = 2, 32, 32, 8

    key = jax.random.PRNGKey(0)
    k_q, k_h, k_w = jax.random.split(key, 3)

    query = jax.random.normal(k_q, (B, Q), dtype=jnp.float32)
    hist_behavior = jax.random.normal(k_h, (B, L, H), dtype=jnp.float32)

    # Deterministic xavier_normal_ init for biInt_weight of shape (Q, H):
    # std = sqrt(2 / (fan_in + fan_out))
    xavier_std = (2.0 / (Q + H)) ** 0.5
    biInt_weight = xavier_std * jax.random.normal(k_w, (Q, H), dtype=jnp.float32)

    out = bi_interaction_activation_unit(query, biInt_weight, hist_behavior)
    out = jax.block_until_ready(out)

    # Reference check (plain JAX) for the einsum 'bq,qh,blh->bl' + unsqueeze.
    ref = jnp.einsum("bq,qh,blh->bl", query, biInt_weight, hist_behavior)[..., None]
    assert out.shape == (B, L, 1)
    assert jnp.allclose(out, ref, rtol=1e-5, atol=1e-5)

    print("KERNEL_OK")
</pallas_src>

<mosaic_0001>
module attributes {stable_mosaic.version = 11 : i64} {
  func.func @_bi_interaction_kernel(%arg0: i32, %arg1: memref<8x32xf32, #tpu.memory_space<vmem>>, %arg2: memref<8x8x32xf32, #tpu.memory_space<vmem>>, %arg3: memref<8x8xf32, #tpu.memory_space<vmem>>) attributes {dimension_semantics = [#tpu.dimension_semantics<parallel>], iteration_bounds = array<i64: 1>, scalar_prefetch = 0 : i64, scratch_operands = 0 : i64, tpu.core_type = #tpu.core_type<tc>, window_params = [{transform_indices = @transform_0, window_bounds = array<i64: 8, 32>}, {transform_indices = @transform_1, window_bounds = array<i64: 8, 8, 32>}, {transform_indices = @transform_2, window_bounds = array<i64: 8, 8>}]} {
    %c0 = arith.constant 0 : index
    %c0_0 = arith.constant 0 : index
    %0 = vector.load %arg1[%c0, %c0_0] : memref<8x32xf32, #tpu.memory_space<vmem>>, vector<8x32xf32>
    %c0_1 = arith.constant 0 : index
    %c0_2 = arith.constant 0 : index
    %c0_3 = arith.constant 0 : index
    %1 = vector.load %arg2[%c0_1, %c0_2, %c0_3] : memref<8x8x32xf32, #tpu.memory_space<vmem>>, vector<8x8x32xf32>
    %2 = vector.shape_cast %0 : vector<8x32xf32> to vector<8x1x32xf32>
    %3 = vector.broadcast %2 : vector<8x1x32xf32> to vector<8x8x32xf32>
    %4 = arith.mulf %1, %3 : vector<8x8x32xf32>
    %cst = arith.constant dense<0.000000e+00> : vector<8x8xf32>
    %5 = vector.multi_reduction <add>, %4, %cst [2] : vector<8x8x32xf32> to vector<8x8xf32>
    %c0_4 = arith.constant 0 : index
    %c0_5 = arith.constant 0 : index
    %6 = vector.load %arg3[%c0_4, %c0_5] : memref<8x8xf32, #tpu.memory_space<vmem>>, vector<8x8xf32>
    tpu.vector_store %arg3[%c0_4, %c0_5], %5 {strides = array<i32>} : memref<8x8xf32, #tpu.memory_space<vmem>>, vector<8x8xf32>,
    return
  }
  func.func @transform_0(%arg0: i32) -> (i32, i32) {
    %c0_i32 = arith.constant 0 : i32
    %c0_i32_0 = arith.constant 0 : i32
    return %arg0, %c0_i32 : i32, i32
  }
  func.func @transform_1(%arg0: i32) -> (i32, i32, i32) {
    %c0_i32 = arith.constant 0 : i32
    %c0_i32_0 = arith.constant 0 : i32
    %c0_i32_1 = arith.constant 0 : i32
    return %arg0, %c0_i32, %c0_i32_0 : i32, i32, i32
  }
  func.func @transform_2(%arg0: i32) -> (i32, i32) {
    %c0_i32 = arith.constant 0 : i32
    %c0_i32_0 = arith.constant 0 : i32
    return %arg0, %c0_i32 : i32, i32
  }
}

</mosaic_0001>

<bundles_post_ra>
// kernel: tpu_custom_call.1
= control target key start
LH: loop header
LB: loop body
LE: loop exit
PB: predicated region body
PF: predicated region fallthrough
CT: control target
= control target key end

     0   :  { %7 = vsyncpa [#allocation3], 0  ;;  %s281_s0 = inlined_call_operand.hbm [shape: f32[8,32], index: 0, kind: input, shape index: {}]   ;;  %s282_s1 = inlined_call_operand.hbm [shape: f32[8,8,32], index: 1, kind: input, shape index: {}]   ;;  %s283_s2 = inlined_call_operand.hbm [shape: f32[8,8], index: 2, kind: output, shape index: {}]  }
   0x1   :  { %8 = vsyncpa [#allocation6], 0 }
   0x2   :  { %9 = vsyncpa [#allocation4], 0  ;;  %s15_s11 = sshll.u32 %s281_s0, 4  ;;  %s244_s12 = smov [#allocation2]   ;;  %s16_s11 = int_to_ptr.hbm [resolvable:$true] %s15_s11 }
   0x3   :  { %s17_s13 = sshll.u32 %s244_s12, 4  ;;  %s25_s16 = sshll.u32 %s282_s1, 4  ;;  %s18_s13 = int_to_ptr.vmem [resolvable:$true] %s17_s13  ;;  %s26_s16 = int_to_ptr.hbm [resolvable:$true] %s25_s16 }
   0x4   :  { %20 = dma.hbm_to_vmem [thread:$0]  %s16_s11, 128, %s18_s13, [#allocation3]  }
   0x5   :  { %s245_s17 = smov [#allocation5]   ;;  %s246_s19 = smov 128  }
   0x6   :  { %s27_s18 = sshll.u32 %s245_s17, 4  ;;  %s247_s20 = smov 8   ;;  %s28_s18 = int_to_ptr.vmem [resolvable:$true] %s27_s18 }
   0x7   :  { %33 = dma.hbm_to_vmem [thread:$0]  %s26_s16, 1024, %s28_s18, [#allocation6], %s246_s19, %s246_s19, %s247_s20  }
   0x8   :  { %238 = dma.done.wait [#allocation3], 128  }
   0x9   :  { %239 = vsyncadd [#allocation3], 4294967168 }
   0xa   :  { %240 = dma.done.wait [#allocation6], 1024  }
   0xb   :  { %241 = vsyncadd [#allocation6], 4294966272  ;;  %v42_v0 = vld [vmem:[#allocation2] sm:$0xff]  ;;  %v43_v1 = vld [vmem:[#allocation5] sm:$0xff]  ;;  %vm83_vm0 = vcmask 261120   ;;  %v116_v41 = vlaneseq  ;;  %vm126_vm1 = vcmask 1041409  }
   0xc   :  { %v59_v2 = vperm.slane %v42_v0, 0  ;;  %v53_v3 = vrot.slane %v42_v0, 2  ;;  %v55_v4 = vrot.slane %v42_v0, 4  ;;  %v52_v5 = vrot.slane %v42_v0, 1  ;;  %v45_v6 = vld [vmem:[#allocation5 + $0x10] sm:$0xff]  ;;  %v47_v7 = vld [vmem:[#allocation5 + $0x20] sm:$0xff] }
   0xd   :  { %v54_v8 = vrot.slane %v42_v0, 3  ;;  %v56_v9 = vrot.slane %v42_v0, 5  ;;  %v44_v14 = vld [vmem:[#allocation5 + $0x8] sm:$0xff]  ;;  %v46_v20 = vld [vmem:[#allocation5 + $0x18] sm:$0xff]  ;;  %v57_v25 = vrot.slane %v42_v0, 6  ;;  %v58_v28 = vrot.slane %v42_v0, 7 }
   0xe   :  { %v75_v10 = vmul.f32 %v59_v2, %v43_v1  ;;  %v61_v11 = vperm.slane %v53_v3, 0  ;;  %v63_v12 = vperm.slane %v55_v4, 0  ;;  %v60_v13 = vperm.slane %v52_v5, 0  ;;  %v48_v21 = vld [vmem:[#allocation5 + $0x28] sm:$0xff]  ;;  %v49_v31 = vld [vmem:[#allocation5 + $0x30] sm:$0xff]  ;;  %v50_v35 = vld [vmem:[#allocation5 + $0x38] sm:$0xff] }
   0xf   :  { %v62_v15 = vperm.slane %v54_v8, 0  ;;  %v64_v19 = vperm.slane %v56_v9, 0  ;;  %v65_v30 = vperm.slane %v57_v25, 0  ;;  %v66_v34 = vperm.slane %v58_v28, 0  ;;  %s248_s0 = smov [#allocation7]   ;;  %s150_s23 = sshll.u32 %s283_s2, 4  ;;  %s151_s23 = int_to_ptr.hbm [resolvable:$true] %s150_s23 }
  0x10   :  { %v84_v16 = vsel %vm83_vm0, %v75_v10, 0.0  ;;  %v77_v17 = vmul.f32 %v61_v11, %v45_v6  ;;  %v79_v18 = vmul.f32 %v63_v12, %v47_v7  ;;  %v76_v24 = vmul.f32 %v60_v13, %v44_v14  ;;  %s148_s1 = sshll.u32 %s248_s0, 4  ;;  %s149_s1 = int_to_ptr.vmem [resolvable:$true] %s148_s1 }
  0x11   :  { %85 = vadd.xlane.f32.xlu0 %v84_v16  ;;  %v78_v26 = vmul.f32 %v62_v15, %v46_v20  ;;  %v80_v27 = vmul.f32 %v64_v19, %v48_v21  ;;  %v81_v36 = vmul.f32 %v65_v30, %v49_v31  ;;  %v82_v37 = vmul.f32 %v66_v34, %v50_v35 }
  0x12   :  { %v90_v22 = vsel %vm83_vm0, %v77_v17, 0.0  ;;  %v96_v23 = vsel %vm83_vm0, %v79_v18, 0.0  ;;  %v87_v29 = vsel %vm83_vm0, %v76_v24, 0.0  ;;  %v117_v44 = vand.u32 127, %v116_v41 }
  0x13   :  { %91 = vadd.xlane.f32.xlu1 %v90_v22  ;;  %97 = vadd.xlane.f32.xlu2 %v96_v23  ;;  %v93_v32 = vsel %vm83_vm0, %v78_v26, 0.0  ;;  %v99_v33 = vsel %vm83_vm0, %v80_v27, 0.0  ;;  %v102_v38 = vsel %vm83_vm0, %v81_v36, 0.0  ;;  %v105_v39 = vsel %vm83_vm0, %v82_v37, 0.0 }
  0x14   :  { %vm128_vm2 = vcmask 1042434   ;;  %vm130_vm3 = vcmask 1043459   ;;  %vm132_vm4 = vcmask 1044484   ;;  %vm134_vm5 = vcmask 1045509  }
  0x15   :  { %vm136_vm6 = vcmask 1046534   ;;  %vm138_vm7 = vcmask 1047559   ;;  %vm141_vm8 = vcmask 64512  }
  0x19   :  { %88 = vadd.xlane.f32.xlu0 %v87_v29 }
  0x1b   :  { %94 = vadd.xlane.f32.xlu1 %v93_v32  ;;  %100 = vadd.xlane.f32.xlu2 %v99_v33 }
  0x21   :  { %103 = vadd.xlane.f32.xlu0 %v102_v38 }
  0x23   :  { %106 = vadd.xlane.f32.xlu1 %v105_v39 }
  0x84   :  { %v86_v40 = vpop.xlane.xlu0 %85 }
  0x85   :  { %v118_v46 = vperm.slane %v86_v40, %v117_v44 }
  0x86   :  { %v92_v42 = vpop.xlane.xlu1 %91  ;;  %v98_v43 = vpop.xlane.xlu2 %97 }
  0x87   :  { %v120_v48 = vperm.slane %v92_v42, %v117_v44  ;;  %v122_v54 = vperm.slane %v98_v43, %v117_v44 }
  0x8c   :  { %v89_v45 = vpop.xlane.xlu0 %88 }
  0x8d   :  { %v119_v47 = vperm.slane %v89_v45, %v117_v44 }
  0x8e   :  { %v95_v49 = vpop.xlane.xlu1 %94  ;;  %v101_v52 = vpop.xlane.xlu2 %100 }
  0x8f   :  { %v127_v50 = vsel %vm126_vm1, %v119_v47, %v118_v46  ;;  %v121_v51 = vperm.slane %v95_v49, %v117_v44  ;;  %v123_v56 = vperm.slane %v101_v52, %v117_v44 }
  0x90   :  { %v129_v53 = vsel %vm128_vm2, %v120_v48, %v127_v50 }
  0x91   :  { %v131_v55 = vsel %vm130_vm3, %v121_v51, %v129_v53 }
  0x92   :  { %v133_v57 = vsel %vm132_vm4, %v122_v54, %v131_v55 }
  0x93   :  { %v135_v60 = vsel %vm134_vm5, %v123_v56, %v133_v57 }
  0x94   :  { %v104_v58 = vpop.xlane.xlu0 %103 }
  0x95   :  { %v124_v59 = vperm.slane %v104_v58, %v117_v44 }
  0x96   :  { %v107_v61 = vpop.xlane.xlu1 %106 }
  0x97   :  { %v137_v62 = vsel %vm136_vm6, %v124_v59, %v135_v60  ;;  %v125_v63 = vperm.slane %v107_v61, %v117_v44 }
  0x99   :  { %v139_v0 = vsel %vm138_vm7, %v125_v63, %v137_v62 }
  0x9a   :  { %142 = vst.msk [vmem:[#allocation7] sm:$0xff] %vm141_vm8, %v139_v0 }
  0x9b   :  { %153 = dma.vmem_to_hbm [thread:$0]  %s149_s1, 128, %s151_s23, [#allocation4]  }
  0x9c   :  { %242 = dma.done.wait [#allocation4], 128  }
  0x9d   :  { %243 = vsyncadd [#allocation4], 4294967168 }
  0x9e   :  { %158 = vsyncpa [#allocation3], 1 }
  0x9f   :  { %159 = vsyncpa [#allocation6], 1 }
  0xa0   :  { %160 = vsyncpa [#allocation4], 1 }

</bundles_post_ra>
